<compile_context>
chip_gen: v5e
topology: v5e:2x2
jax: 0.10.0
libtpu: 0.0.40
codegen_flags: <defaults>
</compile_context>

<pallas_src>
import functools

import jax
import jax.numpy as jnp
import numpy as np
from jax.experimental import pallas as pl
from jax.experimental.pallas import tpu as pltpu

GAMMA = 2.0  # module hard-codes gamma=2 -> focal factor computed as (1-pt)*(1-pt)


def _focal_loss_kernel(x_ref, t_ref, o_ref, *, hw, need_mask, assume_one_hot):
    C = x_ref.shape[1]
    tile_s = x_ref.shape[2]
    L = x_ref.shape[3]

    x = x_ref[0].astype(jnp.float32)   # (C, tile_s, 128) logits
    t = t_ref[0].astype(jnp.float32)   # (C, tile_s, 128) targets (one-hot or soft)

    # ---- log-softmax pieces over the tiny static class axis: unrolled => pure VPU/EUP,
    #      every op acts on full 128-lane vregs.
    xmax = x[0]
    for c in range(1, C):
        xmax = jnp.maximum(xmax, x[c])
    denom = jnp.exp(x[0] - xmax)
    for c in range(1, C):
        denom = denom + jnp.exp(x[c] - xmax)
    lse = jnp.log(denom)

    if assume_one_hot:
        # targets are exact one-hot: select logit at the hot class directly
        x_sel = x[0] * t[0]
        for c in range(1, C):
            x_sel = x_sel + x[c] * t[c]
    else:
        # label = argmax_c targets[c]  (first maximal index == torch.argmax semantics)
        tmax = t[0]
        for c in range(1, C):
            tmax = jnp.maximum(tmax, t[c])
        label = jnp.full((tile_s, L), C, jnp.int32)
        for c in range(C - 1, -1, -1):
            label = jnp.where(t[c] == tmax, jnp.int32(c), label)
        x_sel = jnp.zeros((tile_s, L), jnp.float32)
        for c in range(C):
            x_sel = x_sel + jnp.where(label == c, x[c], 0.0)

    log_pt = x_sel - xmax - lse          # log p_target
    pt = jnp.exp(log_pt)
    ce = -log_pt                         # NLL (alpha=None)
    u = 1.0 - pt
    loss = (u * u) * ce                  # gamma == 2

    if need_mask:
        # mask padded spatial tail; hw is a static Python int
        j = pl.program_id(1)
        sub = jax.lax.broadcasted_iota(jnp.int32, (tile_s, L), 0)
        lane = jax.lax.broadcasted_iota(jnp.int32, (tile_s, L), 1)
        pos = j * (tile_s * L) + sub * L + lane
        loss = jnp.where(pos < hw, loss, 0.0)

    # per-block partial sum, reduced to a single lane-dense vreg. When tile_s is a
    # multiple of 8 this is pure VPU (adding whole (8,128) vregs together).
    if tile_s % 8 == 0:
        partial = jnp.sum(loss.reshape(tile_s // 8, 8, L), axis=0)   # (8, 128)
    else:
        partial = jnp.sum(loss, axis=0, keepdims=True)               # (1, 128)
    o_ref[0, 0] = partial


@functools.partial(jax.jit, static_argnames=("block_spatial", "assume_one_hot"))
def focal_loss(inputs, targets, block_spatial=32768, assume_one_hot=False):
    """inputs, targets: (N, C, H, W). Returns scalar mean multi-class focal loss."""
    N, C, H, W = inputs.shape
    HW = H * W
    M = N * HW
    LANES, SUB = 128, 8

    # --- choose spatial tile: large enough to amortize per-step pipeline overhead,
    #     but 2 inputs x 2 buffers x (C*tile_s*128*4B) stays well inside VMEM on
    #     v5e/v6e (128 MiB) and v7x (64 MiB).
    max_tile_s = max(SUB, (block_spatial // LANES) // SUB * SUB)
    vmem_cap_s = max(SUB, (2 * 1024 * 1024) // (C * LANES * 4) // SUB * SUB)
    max_tile_s = min(max_tile_s, vmem_cap_s)

    s_needed = pl.cdiv(HW, LANES)
    if s_needed <= max_tile_s:
        tile_s = s_needed                 # single spatial block per image
        S = s_needed
    else:
        tile_s = max_tile_s               # multiple of 8
        S = pl.cdiv(s_needed, tile_s) * tile_s
    hw_pad = S * LANES
    J = S // tile_s
    out_rows = SUB if tile_s % SUB == 0 else 1

    # --- free reshape of contiguous NCHW (no transpose); pad only a ragged tail.
    x = inputs.reshape(N, C, HW)
    t = targets.reshape(N, C, HW)
    if hw_pad != HW:
        x = jnp.pad(x, ((0, 0), (0, 0), (0, hw_pad - HW)))
        t = jnp.pad(t, ((0, 0), (0, 0), (0, hw_pad - HW)))
    x = x.reshape(N, C, S, LANES)
    t = t.reshape(N, C, S, LANES)

    kernel = functools.partial(
        _focal_loss_kernel,
        hw=HW,
        need_mask=(hw_pad != HW),
        assume_one_hot=assume_one_hot,
    )

    partials = pl.pallas_call(
        kernel,
        out_shape=jax.ShapeDtypeStruct((N, J, out_rows, LANES), jnp.float32),
        grid=(N, J),
        in_specs=[
            pl.BlockSpec((1, C, tile_s, LANES), lambda n, j: (n, 0, j, 0)),
            pl.BlockSpec((1, C, tile_s, LANES), lambda n, j: (n, 0, j, 0)),
        ],
        out_specs=pl.BlockSpec((1, 1, out_rows, LANES), lambda n, j: (n, j, 0, 0)),
        compiler_params=pltpu.CompilerParams(
            dimension_semantics=("parallel", "parallel")),
    )(x, t)

    return jnp.sum(partials) / jnp.float32(M)   # reduction='mean'


def _reference(inputs, targets):
    # pure-JAX reference of the module's math, for a sanity check
    N, C, H, W = inputs.shape
    x = jnp.transpose(inputs, (0, 2, 3, 1)).reshape(-1, C).astype(jnp.float32)
    t = jnp.transpose(targets, (0, 2, 3, 1)).reshape(-1, C).astype(jnp.float32)
    labels = jnp.argmax(t, axis=-1)
    log_p = jax.nn.log_softmax(x, axis=-1)
    log_pt = jnp.take_along_axis(log_p, labels[:, None], axis=-1)[:, 0]
    pt = jnp.exp(log_pt)
    return jnp.mean(((1.0 - pt) ** GAMMA) * (-log_pt))


def _make_case(key, N, C, H, W):
    k1, k2 = jax.random.split(key)
    logits = jax.random.normal(k1, (N, C, H, W), dtype=jnp.float32)
    cls = jax.random.randint(k2, (N, H, W), 0, C)
    onehot = jax.nn.one_hot(cls, C, axis=1, dtype=jnp.float32)   # (N, C, H, W)
    return logits, onehot


if __name__ == "__main__":
    key = jax.random.PRNGKey(0)
    k0, k1, k2 = jax.random.split(key, 3)

    # main case (matches the module's typical segmentation inputs, small shapes)
    inputs, targets = _make_case(k0, 2, 4, 16, 16)
    loss = focal_loss(inputs, targets)
    jax.block_until_ready(loss)
    ref = _reference(inputs, targets)
    if not np.allclose(np.asarray(loss), np.asarray(ref), rtol=1e-5, atol=1e-5):
        raise AssertionError(f"mismatch (case 1): kernel={loss} ref={ref}")

    # ragged spatial tail (H*W not a multiple of 128) -> exercises in-kernel mask
    inputs2, targets2 = _make_case(k1, 1, 3, 10, 10)
    loss2 = focal_loss(inputs2, targets2)
    jax.block_until_ready(loss2)
    ref2 = _reference(inputs2, targets2)
    if not np.allclose(np.asarray(loss2), np.asarray(ref2), rtol=1e-5, atol=1e-5):
        raise AssertionError(f"mismatch (case 2): kernel={loss2} ref={ref2}")

    # multi-block grid with small forced tile -> exercises the tiled/partial-sum path
    inputs3, targets3 = _make_case(k2, 1, 4, 48, 48)
    loss3 = focal_loss(inputs3, targets3, block_spatial=1024)
    jax.block_until_ready(loss3)
    ref3 = _reference(inputs3, targets3)
    if not np.allclose(np.asarray(loss3), np.asarray(ref3), rtol=1e-5, atol=1e-5):
        raise AssertionError(f"mismatch (case 3): kernel={loss3} ref={ref3}")

    print("KERNEL_OK")
</pallas_src>

<mosaic_0001>
module attributes {stable_mosaic.version = 11 : i64} {
  func.func @_focal_loss_kernel(%arg0: i32, %arg1: i32, %arg2: memref<1x4x2x128xf32, #tpu.memory_space<vmem>>, %arg3: memref<1x4x2x128xf32, #tpu.memory_space<vmem>>, %arg4: memref<1x1x1x128xf32, #tpu.memory_space<vmem>>) attributes {dimension_semantics = [#tpu.dimension_semantics<parallel>, #tpu.dimension_semantics<parallel>], iteration_bounds = array<i64: 2, 1>, scalar_prefetch = 0 : i64, scratch_operands = 0 : i64, tpu.core_type = #tpu.core_type<tc>, window_params = [{transform_indices = @transform_0, window_bounds = array<i64: 1, 4, 2, 128>}, {transform_indices = @transform_1, window_bounds = array<i64: 1, 4, 2, 128>}, {transform_indices = @transform_2, window_bounds = array<i64: 1, 1, 1, 128>}]} {
    %c0 = arith.constant 0 : index
    %c0_0 = arith.constant 0 : index
    %c0_1 = arith.constant 0 : index
    %c0_2 = arith.constant 0 : index
    %0 = vector.load %arg2[%c0, %c0_0, %c0_1, %c0_2] : memref<1x4x2x128xf32, #tpu.memory_space<vmem>>, vector<1x4x2x128xf32>
    %1 = vector.shape_cast %0 : vector<1x4x2x128xf32> to vector<4x2x128xf32>
    %c0_3 = arith.constant 0 : index
    %c0_4 = arith.constant 0 : index
    %c0_5 = arith.constant 0 : index
    %c0_6 = arith.constant 0 : index
    %2 = vector.load %arg3[%c0_3, %c0_4, %c0_5, %c0_6] : memref<1x4x2x128xf32, #tpu.memory_space<vmem>>, vector<1x4x2x128xf32>
    %3 = vector.shape_cast %2 : vector<1x4x2x128xf32> to vector<4x2x128xf32>
    %4 = vector.extract_strided_slice %1 {offsets = [0, 0, 0], sizes = [1, 2, 128], strides = [1, 1, 1]} : vector<4x2x128xf32> to vector<1x2x128xf32>
    %5 = vector.shape_cast %4 : vector<1x2x128xf32> to vector<2x128xf32>
    %6 = vector.extract_strided_slice %1 {offsets = [1, 0, 0], sizes = [1, 2, 128], strides = [1, 1, 1]} : vector<4x2x128xf32> to vector<1x2x128xf32>
    %7 = vector.shape_cast %6 : vector<1x2x128xf32> to vector<2x128xf32>
    %8 = arith.maximumf %5, %7 : vector<2x128xf32>
    %9 = vector.extract_strided_slice %1 {offsets = [2, 0, 0], sizes = [1, 2, 128], strides = [1, 1, 1]} : vector<4x2x128xf32> to vector<1x2x128xf32>
    %10 = vector.shape_cast %9 : vector<1x2x128xf32> to vector<2x128xf32>
    %11 = arith.maximumf %8, %10 : vector<2x128xf32>
    %12 = vector.extract_strided_slice %1 {offsets = [3, 0, 0], sizes = [1, 2, 128], strides = [1, 1, 1]} : vector<4x2x128xf32> to vector<1x2x128xf32>
    %13 = vector.shape_cast %12 : vector<1x2x128xf32> to vector<2x128xf32>
    %14 = arith.maximumf %11, %13 : vector<2x128xf32>
    %15 = vector.extract_strided_slice %1 {offsets = [0, 0, 0], sizes = [1, 2, 128], strides = [1, 1, 1]} : vector<4x2x128xf32> to vector<1x2x128xf32>
    %16 = vector.shape_cast %15 : vector<1x2x128xf32> to vector<2x128xf32>
    %17 = arith.subf %16, %14 : vector<2x128xf32>
    %18 = math.exp %17 : vector<2x128xf32>
    %19 = vector.extract_strided_slice %1 {offsets = [1, 0, 0], sizes = [1, 2, 128], strides = [1, 1, 1]} : vector<4x2x128xf32> to vector<1x2x128xf32>
    %20 = vector.shape_cast %19 : vector<1x2x128xf32> to vector<2x128xf32>
    %21 = arith.subf %20, %14 : vector<2x128xf32>
    %22 = math.exp %21 : vector<2x128xf32>
    %23 = arith.addf %18, %22 : vector<2x128xf32>
    %24 = vector.extract_strided_slice %1 {offsets = [2, 0, 0], sizes = [1, 2, 128], strides = [1, 1, 1]} : vector<4x2x128xf32> to vector<1x2x128xf32>
    %25 = vector.shape_cast %24 : vector<1x2x128xf32> to vector<2x128xf32>
    %26 = arith.subf %25, %14 : vector<2x128xf32>
    %27 = math.exp %26 : vector<2x128xf32>
    %28 = arith.addf %23, %27 : vector<2x128xf32>
    %29 = vector.extract_strided_slice %1 {offsets = [3, 0, 0], sizes = [1, 2, 128], strides = [1, 1, 1]} : vector<4x2x128xf32> to vector<1x2x128xf32>
    %30 = vector.shape_cast %29 : vector<1x2x128xf32> to vector<2x128xf32>
    %31 = arith.subf %30, %14 : vector<2x128xf32>
    %32 = math.exp %31 : vector<2x128xf32>
    %33 = arith.addf %28, %32 : vector<2x128xf32>
    %34 = math.log %33 : vector<2x128xf32>
    %35 = vector.extract_strided_slice %3 {offsets = [0, 0, 0], sizes = [1, 2, 128], strides = [1, 1, 1]} : vector<4x2x128xf32> to vector<1x2x128xf32>
    %36 = vector.shape_cast %35 : vector<1x2x128xf32> to vector<2x128xf32>
    %37 = vector.extract_strided_slice %3 {offsets = [1, 0, 0], sizes = [1, 2, 128], strides = [1, 1, 1]} : vector<4x2x128xf32> to vector<1x2x128xf32>
    %38 = vector.shape_cast %37 : vector<1x2x128xf32> to vector<2x128xf32>
    %39 = arith.maximumf %36, %38 : vector<2x128xf32>
    %40 = vector.extract_strided_slice %3 {offsets = [2, 0, 0], sizes = [1, 2, 128], strides = [1, 1, 1]} : vector<4x2x128xf32> to vector<1x2x128xf32>
    %41 = vector.shape_cast %40 : vector<1x2x128xf32> to vector<2x128xf32>
    %42 = arith.maximumf %39, %41 : vector<2x128xf32>
    %43 = vector.extract_strided_slice %3 {offsets = [3, 0, 0], sizes = [1, 2, 128], strides = [1, 1, 1]} : vector<4x2x128xf32> to vector<1x2x128xf32>
    %44 = vector.shape_cast %43 : vector<1x2x128xf32> to vector<2x128xf32>
    %45 = arith.maximumf %42, %44 : vector<2x128xf32>
    %c4_i32 = arith.constant 4 : i32
    %46 = vector.broadcast %c4_i32 : i32 to vector<2x128xi32>
    %47 = vector.extract_strided_slice %3 {offsets = [3, 0, 0], sizes = [1, 2, 128], strides = [1, 1, 1]} : vector<4x2x128xf32> to vector<1x2x128xf32>
    %48 = vector.shape_cast %47 : vector<1x2x128xf32> to vector<2x128xf32>
    %49 = arith.cmpf oeq, %48, %45 : vector<2x128xf32>
    %c3_i32 = arith.constant 3 : i32
    %50 = vector.broadcast %c3_i32 : i32 to vector<2x128xi32>
    %51 = arith.select %49, %50, %46 : vector<2x128xi1>, vector<2x128xi32>
    %52 = vector.extract_strided_slice %3 {offsets = [2, 0, 0], sizes = [1, 2, 128], strides = [1, 1, 1]} : vector<4x2x128xf32> to vector<1x2x128xf32>
    %53 = vector.shape_cast %52 : vector<1x2x128xf32> to vector<2x128xf32>
    %54 = arith.cmpf oeq, %53, %45 : vector<2x128xf32>
    %c2_i32 = arith.constant 2 : i32
    %55 = vector.broadcast %c2_i32 : i32 to vector<2x128xi32>
    %56 = arith.select %54, %55, %51 : vector<2x128xi1>, vector<2x128xi32>
    %57 = vector.extract_strided_slice %3 {offsets = [1, 0, 0], sizes = [1, 2, 128], strides = [1, 1, 1]} : vector<4x2x128xf32> to vector<1x2x128xf32>
    %58 = vector.shape_cast %57 : vector<1x2x128xf32> to vector<2x128xf32>
    %59 = arith.cmpf oeq, %58, %45 : vector<2x128xf32>
    %c1_i32 = arith.constant 1 : i32
    %60 = vector.broadcast %c1_i32 : i32 to vector<2x128xi32>
    %61 = arith.select %59, %60, %56 : vector<2x128xi1>, vector<2x128xi32>
    %62 = vector.extract_strided_slice %3 {offsets = [0, 0, 0], sizes = [1, 2, 128], strides = [1, 1, 1]} : vector<4x2x128xf32> to vector<1x2x128xf32>
    %63 = vector.shape_cast %62 : vector<1x2x128xf32> to vector<2x128xf32>
    %64 = arith.cmpf oeq, %63, %45 : vector<2x128xf32>
    %c0_i32 = arith.constant 0 : i32
    %65 = vector.broadcast %c0_i32 : i32 to vector<2x128xi32>
    %66 = arith.select %64, %65, %61 : vector<2x128xi1>, vector<2x128xi32>
    %cst = arith.constant 0.000000e+00 : f32
    %67 = vector.broadcast %cst : f32 to vector<2x128xf32>
    %c0_i32_7 = arith.constant 0 : i32
    %68 = vector.broadcast %c0_i32_7 : i32 to vector<2x128xi32>
    %69 = arith.cmpi eq, %66, %68 : vector<2x128xi32>
    %70 = vector.extract_strided_slice %1 {offsets = [0, 0, 0], sizes = [1, 2, 128], strides = [1, 1, 1]} : vector<4x2x128xf32> to vector<1x2x128xf32>
    %71 = vector.shape_cast %70 : vector<1x2x128xf32> to vector<2x128xf32>
    %cst_8 = arith.constant 0.000000e+00 : f32
    %72 = vector.broadcast %cst_8 : f32 to vector<2x128xf32>
    %73 = arith.select %69, %71, %72 : vector<2x128xi1>, vector<2x128xf32>
    %74 = arith.addf %67, %73 : vector<2x128xf32>
    %c1_i32_9 = arith.constant 1 : i32
    %75 = vector.broadcast %c1_i32_9 : i32 to vector<2x128xi32>
    %76 = arith.cmpi eq, %66, %75 : vector<2x128xi32>
    %77 = vector.extract_strided_slice %1 {offsets = [1, 0, 0], sizes = [1, 2, 128], strides = [1, 1, 1]} : vector<4x2x128xf32> to vector<1x2x128xf32>
    %78 = vector.shape_cast %77 : vector<1x2x128xf32> to vector<2x128xf32>
    %cst_10 = arith.constant 0.000000e+00 : f32
    %79 = vector.broadcast %cst_10 : f32 to vector<2x128xf32>
    %80 = arith.select %76, %78, %79 : vector<2x128xi1>, vector<2x128xf32>
    %81 = arith.addf %74, %80 : vector<2x128xf32>
    %c2_i32_11 = arith.constant 2 : i32
    %82 = vector.broadcast %c2_i32_11 : i32 to vector<2x128xi32>
    %83 = arith.cmpi eq, %66, %82 : vector<2x128xi32>
    %84 = vector.extract_strided_slice %1 {offsets = [2, 0, 0], sizes = [1, 2, 128], strides = [1, 1, 1]} : vector<4x2x128xf32> to vector<1x2x128xf32>
    %85 = vector.shape_cast %84 : vector<1x2x128xf32> to vector<2x128xf32>
    %cst_12 = arith.constant 0.000000e+00 : f32
    %86 = vector.broadcast %cst_12 : f32 to vector<2x128xf32>
    %87 = arith.select %83, %85, %86 : vector<2x128xi1>, vector<2x128xf32>
    %88 = arith.addf %81, %87 : vector<2x128xf32>
    %c3_i32_13 = arith.constant 3 : i32
    %89 = vector.broadcast %c3_i32_13 : i32 to vector<2x128xi32>
    %90 = arith.cmpi eq, %66, %89 : vector<2x128xi32>
    %91 = vector.extract_strided_slice %1 {offsets = [3, 0, 0], sizes = [1, 2, 128], strides = [1, 1, 1]} : vector<4x2x128xf32> to vector<1x2x128xf32>
    %92 = vector.shape_cast %91 : vector<1x2x128xf32> to vector<2x128xf32>
    %cst_14 = arith.constant 0.000000e+00 : f32
    %93 = vector.broadcast %cst_14 : f32 to vector<2x128xf32>
    %94 = arith.select %90, %92, %93 : vector<2x128xi1>, vector<2x128xf32>
    %95 = arith.addf %88, %94 : vector<2x128xf32>
    %96 = arith.subf %95, %14 : vector<2x128xf32>
    %97 = arith.subf %96, %34 : vector<2x128xf32>
    %98 = math.exp %97 : vector<2x128xf32>
    %cst_15 = arith.constant 0.000000e+00 : f32
    %99 = vector.broadcast %cst_15 : f32 to vector<2x128xf32>
    %100 = arith.subf %99, %97 : vector<2x128xf32>
    %cst_16 = arith.constant 1.000000e+00 : f32
    %101 = vector.broadcast %cst_16 : f32 to vector<2x128xf32>
    %102 = arith.subf %101, %98 : vector<2x128xf32>
    %103 = arith.mulf %102, %102 : vector<2x128xf32>
    %104 = arith.mulf %103, %100 : vector<2x128xf32>
    %cst_17 = arith.constant dense<0.000000e+00> : vector<128xf32>
    %105 = vector.multi_reduction <add>, %104, %cst_17 [0] : vector<2x128xf32> to vector<128xf32>
    %106 = vector.shape_cast %105 : vector<128xf32> to vector<1x128xf32>
    %c0_18 = arith.constant 0 : index
    %c0_19 = arith.constant 0 : index
    %c0_20 = arith.constant 0 : index
    %c0_21 = arith.constant 0 : index
    %107 = vector.load %arg4[%c0_18, %c0_19, %c0_20, %c0_21] : memref<1x1x1x128xf32, #tpu.memory_space<vmem>>, vector<1x1x1x128xf32>
    %108 = vector.shape_cast %107 : vector<1x1x1x128xf32> to vector<1x128xf32>
    %109 = vector.shape_cast %106 : vector<1x128xf32> to vector<1x1x1x128xf32>
    tpu.vector_store %arg4[%c0_18, %c0_19, %c0_20, %c0_21], %109 {strides = array<i32>} : memref<1x1x1x128xf32, #tpu.memory_space<vmem>>, vector<1x1x1x128xf32>,
    return
  }
  func.func @transform_0(%arg0: i32, %arg1: i32) -> (i32, i32, i32, i32) {
    %c0_i32 = arith.constant 0 : i32
    %c0_i32_0 = arith.constant 0 : i32
    %c0_i32_1 = arith.constant 0 : i32
    return %arg0, %c0_i32, %arg1, %c0_i32_0 : i32, i32, i32, i32
  }
  func.func @transform_1(%arg0: i32, %arg1: i32) -> (i32, i32, i32, i32) {
    %c0_i32 = arith.constant 0 : i32
    %c0_i32_0 = arith.constant 0 : i32
    %c0_i32_1 = arith.constant 0 : i32
    return %arg0, %c0_i32, %arg1, %c0_i32_0 : i32, i32, i32, i32
  }
  func.func @transform_2(%arg0: i32, %arg1: i32) -> (i32, i32, i32, i32) {
    %c0_i32 = arith.constant 0 : i32
    %c0_i32_0 = arith.constant 0 : i32
    %c0_i32_1 = arith.constant 0 : i32
    return %arg0, %arg1, %c0_i32, %c0_i32_0 : i32, i32, i32, i32
  }
}

</mosaic_0001>

<bundles_post_ra>
// kernel: focal_loss.1
= control target key start
LH: loop header
LB: loop body
LE: loop exit
PB: predicated region body
PF: predicated region fallthrough
CT: control target
= control target key end

     0   :  { %s449_s9 = smov 0   ;;  %s451_s10 = smov 0   ;;  %s489_s0 = inlined_call_operand.vmem [shape: f32[2,4,2,128], index: 0, kind: input, shape index: {}]   ;;  %s490_s1 = inlined_call_operand.vmem [shape: f32[2,4,2,128], index: 1, kind: input, shape index: {}]   ;;  %s491_s2 = inlined_call_operand.vmem [shape: f32[2,1,1,128], index: 2, kind: output, shape index: {}]  }
   0x1   :  { %s453_s11 = smov 0  }
   0x2 LB: > { %s24_s12 = sadd.s32 1, %s427_s10  ;;  %p363_p0 = scmp.ge.s32.totalorder %s431_s11, 1  ;;  %s431_s11 = sphi %s453_s11, %s12_s11   ;;  %s427_s10 = sphi %s451_s10, %s493_s10   ;;  %s423_s9 = sphi %s449_s9, %s492_s9  }
   0x3   : > { %p26_p1 = scmp.ge.s32.totalorder %s24_s12, 2  ;;  %p146_p2 = scmp.lt.s32.totalorder %s431_s11, 3 }
   0x5   : > { %s495_s12 = smov (%p26_p1, %s24_s12), 0  ;;  %p147_p3 = pnand %p363_p0, %p146_p2 }
   0x6   : > { %p180_p4 = scmp.lt.s32.totalorder (!%p147_p3), %s423_s9, 1 }
   0x7   : > { %150 = sbr.rel (%p147_p3) target bundleno = 80 (0x50), region = 28 }
   0xc   : > { %s497_s9 = smov (!%p180_p4, %s423_s9), 1  ;;  %v433_v22 = vmov 4   ;;  %vm261_vm8 = vcmask 1041408  }
   0xd   : > { %s370_s13 = sshll.u32 %s497_s9, 3  ;;  %s201_s22 = scalar_lea.vmem %s491_s2, %s497_s9 }
   0xe   : > { %s187_s16 = scalar_lea.vmem %s489_s0, %s370_s13  ;;  %s195_s19 = scalar_lea.vmem %s490_s1, %s370_s13 }
   0xf   : > { %v202_v0 = vld [vmem:[%s187_s16] sm:$0x3]  ;;  %v203_v1 = vld [vmem:[%s187_s16 + $0x2] sm:$0x3]  ;;  %v204_v2 = vld [vmem:[%s187_s16 + $0x4] sm:$0x3] }
  0x10   : > { %v206_v3 = vld [vmem:[%s195_s19] sm:$0x3]  ;;  %v207_v4 = vld [vmem:[%s195_s19 + $0x2] sm:$0x3]  ;;  %v210_v5 = vmax.f32 %v202_v0, %v203_v1  ;;  %v205_v6 = vld [vmem:[%s187_s16 + $0x6] sm:$0x3] }
  0x11   : > { %v208_v7 = vld [vmem:[%s195_s19 + $0x4] sm:$0x3]  ;;  %v230_v8 = vmax.f32 %v206_v3, %v207_v4  ;;  %v209_v9 = vld [vmem:[%s195_s19 + $0x6] sm:$0x3] }
  0x12   : > { %v211_v10 = vmax.f32 %v210_v5, %v204_v2 }
  0x13   : > { %v231_v11 = vmax.f32 %v230_v8, %v208_v7 }
  0x14   : > { %v212_v12 = vmax.f32 %v211_v10, %v205_v6 }
  0x15   : > { %v232_v13 = vmax.f32 %v231_v11, %v209_v9 }
  0x16   : > { %v213_v14 = vsub.f32 %v202_v0, %v212_v12  ;;  %v216_v15 = vsub.f32 %v203_v1, %v212_v12  ;;  %v220_v16 = vsub.f32 %v204_v2, %v212_v12  ;;  %v224_v17 = vsub.f32 %v205_v6, %v212_v12 }
  0x17   : > { %vm233_vm0 = vcmp.eq.f32.partialorder %v209_v9, %v232_v13  ;;  %vm235_vm1 = vcmp.eq.f32.partialorder %v208_v7, %v232_v13  ;;  %vm237_vm2 = vcmp.eq.f32.partialorder %v207_v4, %v232_v13  ;;  %vm239_vm3 = vcmp.eq.f32.partialorder %v206_v3, %v232_v13 }
  0x18   : > { %v214_v18 = vmul.f32 1.442695, %v213_v14  ;;  %v217_v19 = vmul.f32 1.442695, %v216_v15  ;;  %v221_v20 = vmul.f32 1.442695, %v220_v16 }
  0x19   : > { %v225_v21 = vmul.f32 1.442695, %v224_v17  ;;  %v234_v23 = vsel %vm233_vm0, 3, %v433_v22 }
  0x1a   : > { %397 = vpow2.f32 %v214_v18  ;;  %v236_v24 = vsel %vm235_vm1, 2, %v234_v23 }
  0x1b   : > { %399 = vpow2.f32 %v217_v19  ;;  %v238_v25 = vsel %vm237_vm2, 1, %v236_v24 }
  0x1c   : > { %401 = vpow2.f32 %v221_v20  ;;  %v240_v26 = vsel %vm239_vm3, 0, %v238_v25 }
  0x1d   : > { %403 = vpow2.f32 %v225_v21  ;;  %vm241_vm4 = vcmp.eq.s32.totalorder %v240_v26, 0  ;;  %vm244_vm5 = vcmp.eq.s32.totalorder %v240_v26, 1  ;;  %vm247_vm6 = vcmp.eq.s32.totalorder %v240_v26, 2 }
  0x1e   : > { %v242_v27 = vsel %vm241_vm4, %v202_v0, 0.0  ;;  %v245_v28 = vsel %vm244_vm5, %v203_v1, 0.0  ;;  %v248_v34 = vsel %vm247_vm6, %v204_v2, 0.0  ;;  %vm250_vm7 = vcmp.eq.s32.totalorder %v240_v26, 3 }
  0x1f   : > { %v246_v31 = vadd.f32 %v245_v28, %v242_v27  ;;  %v251_v39 = vsel %vm250_vm7, %v205_v6, 0.0 }
  0x20   : > { %v398_v29 = vpop.eup %397 }
  0x21   : > { %v400_v30 = vpop.eup %399  ;;  %v249_v37 = vadd.f32 %v248_v34, %v246_v31 }
  0x22   : > { %v402_v32 = vpop.eup %401  ;;  %v219_v33 = vadd.f32 %v400_v30, %v398_v29 }
  0x23   : > { %v404_v35 = vpop.eup %403  ;;  %v252_v40 = vadd.f32 %v251_v39, %v249_v37 }
  0x24   : > { %v223_v36 = vadd.f32 %v402_v32, %v219_v33 }
  0x25   : > { %v253_v41 = vsub.f32 %v252_v40, %v212_v12 }
  0x26   : > { %v227_v38 = vadd.f32 %v404_v35, %v223_v36 }
  0x28   : > { %405 = vlog2.f32 %v227_v38 }
  0x2e   : > { %v406_v42 = vpop.eup %405 }
  0x2f   : > { %v229_v43 = vmul.f32 0.6931472, %v406_v42 }
  0x31   : > { %v254_v44 = vsub.f32 %v253_v41, %v229_v43 }
  0x33   : > { %v255_v45 = vmul.f32 1.442695, %v254_v44  ;;  %v257_v47 = vsub.f32 0.0, %v254_v44 }
  0x35   : > { %407 = vpow2.f32 %v255_v45 }
  0x3b   : > { %v408_v46 = vpop.eup %407 }
  0x3c   : > { %v258_v48 = vsub.f32 1.0, %v408_v46 }
  0x3e   : > { %v259_v49 = vmul.f32 %v258_v48, %v258_v48 }
  0x40   : > { %v260_v50 = vmul.f32 %v259_v49, %v257_v47 }
  0x42   : > { %v262_v51 = vsel %vm261_vm8, %v260_v50, 0.0 }
  0x43   : > { %v263_v52 = vrot.slane %v262_v51, 4 }
  0x45   : > { %v264_v53 = vadd.f32 %v263_v52, %v262_v51 }
  0x47   : > { %v265_v54 = vrot.slane %v264_v53, 2 }
  0x49   : > { %v266_v55 = vadd.f32 %v265_v54, %v264_v53 }
  0x4b   : > { %v267_v56 = vrot.slane %v266_v55, 1 }
  0x4d   : > { %v268_v57 = vadd.f32 %v267_v56, %v266_v55 }
  0x4f   : > { %269 = vst [vmem:[%s201_s22] sm:$0x1] %v268_v57 }
  0x50 PF: > { %s12_s11 = sadd.s32 1, %s431_s11   ;;  %s492_s9 = smov %s427_s10 }
  0x51   : > { %p9_p5 = scmp.ge.s32.totalorder %s12_s11, 4   ;;  %s493_s10 = smov %s495_s12 }
  0x53   :  { %11 = sbr.rel (!%p9_p5) target bundleno = 2 (0x2), region = 61 }

</bundles_post_ra>
